<compile_context>
chip_gen: v5e
topology: v5e:2x2
jax: 0.10.0
libtpu: 0.0.40
codegen_flags: <defaults>
</compile_context>

<pallas_src>
import functools

import jax
import jax.numpy as jnp
from jax.experimental import pallas as pl
from jax.experimental.pallas import tpu as pltpu

EPS = 1e-4  # matches nn.BatchNorm2d(num_features, eps=0.0001)


def _round_up(x, m):
    return (x + m - 1) // m * m


def _foreach(n, body):
    """Run body(i) for i in [0, n): fully unrolled for short static trip counts."""
    if n <= 8:
        for i in range(n):
            body(i)
    else:
        def wrapped(i, carry):
            body(i)
            return carry
        jax.lax.fori_loop(0, n, wrapped, 0)


def _vmem_budgets():
    """Returns (tile_budget_bytes, vmem_limit_bytes), generation-aware."""
    cap = None
    try:
        cap = int(getattr(pltpu.get_tpu_info(), "vmem_capacity_bytes"))
    except Exception:
        cap = None
    if cap is not None and cap >= (128 << 20):   # v5e / v6e: 128 MiB physical VMEM
        return 40 << 20, 100 << 20
    return 14 << 20, 44 << 20                    # v7x (64 MiB) or unknown: conservative


# --------------------- one-pass kernel (whole HW per block) ---------------------

def _bn_onepass_kernel(x_ref, gamma_ref, beta_ref, o_ref, sum_ref, ss_ref):
    # x_ref/o_ref: (N, Ct, HW); gamma/beta: (Ct, 1); sum/ss scratch: (Ct, 1) f32
    n, _, hw = x_ref.shape
    sum_ref[...] = jnp.zeros_like(sum_ref)
    ss_ref[...] = jnp.zeros_like(ss_ref)

    # Phase 1: stream N slices out of VMEM, accumulating per-channel sum / sum-sq
    # (avoids full-tile f32 temporaries; VMEM->vreg loads are hidden under DMA).
    def stats(i):
        xi = x_ref[i].astype(jnp.float32)                       # (Ct, HW)
        sum_ref[...] += jnp.sum(xi, axis=-1, keepdims=True)
        ss_ref[...] += jnp.sum(xi * xi, axis=-1, keepdims=True)
    _foreach(n, stats)

    inv_count = 1.0 / float(n * hw)
    mean = sum_ref[...] * inv_count
    var = jnp.maximum(ss_ref[...] * inv_count - mean * mean, 0.0)  # no rsqrt(neg)
    inv_std = jax.lax.rsqrt(var + EPS)
    scale = gamma_ref[...] * inv_std                               # (Ct, 1)
    shift = beta_ref[...] - mean * scale

    # Phase 2: stream again, one FMA per element (scale/shift hoisted).
    def norm(i):
        xi = x_ref[i].astype(jnp.float32)
        o_ref[i] = (xi * scale + shift).astype(o_ref.dtype)
    _foreach(n, norm)


def _one_pass(x3, g2, b2, per_ch, budget, vmem_limit, itemsize):
    N, C, HW = x3.shape
    if C <= 8:
        ct = C
    else:
        ct = max(8, (budget // max(per_ch, 1)) // 8 * 8)
        if ct >= C:
            # One block would cover all of C: split into >=2 blocks when possible
            # so ("parallel",) shards across v7x's two TensorCores.
            ct = _round_up(-(-C // 2), 8) if C >= 16 else C

    grid = (pl.cdiv(C, ct),)
    return pl.pallas_call(
        _bn_onepass_kernel,
        out_shape=jax.ShapeDtypeStruct((N, C, HW), x3.dtype),
        grid_spec=pltpu.PrefetchScalarGridSpec(
            num_scalar_prefetch=0,
            grid=grid,
            in_specs=[
                pl.BlockSpec((N, ct, HW), lambda c: (0, c, 0)),
                pl.BlockSpec((ct, 1), lambda c: (c, 0)),
                pl.BlockSpec((ct, 1), lambda c: (c, 0)),
            ],
            out_specs=pl.BlockSpec((N, ct, HW), lambda c: (0, c, 0)),
            scratch_shapes=[pltpu.VMEM((ct, 1), jnp.float32),
                            pltpu.VMEM((ct, 1), jnp.float32)],
        ),
        compiler_params=pltpu.CompilerParams(
            dimension_semantics=("parallel",),
            vmem_limit_bytes=vmem_limit,
        ),
        cost_estimate=pl.CostEstimate(
            flops=5 * N * C * HW,
            transcendentals=C,
            bytes_accessed=2 * N * C * HW * itemsize + 2 * C * 4),
    )(x3, g2, b2)


# ----------------- two-pass fallback (HW-chunked, large N*H*W) -----------------

def _bn_stats_kernel(x_ref, sum_ref, ss_ref, *, hw, lt):
    # x_ref: (N, Ct, Lt); sum/ss: (Ct, 1) accumulators resident across the L axis.
    l = pl.program_id(1)

    @pl.when(l == 0)
    def _():
        sum_ref[...] = jnp.zeros_like(sum_ref)
        ss_ref[...] = jnp.zeros_like(ss_ref)

    n, ct, _ = x_ref.shape
    needs_mask = (hw % lt) != 0
    if needs_mask:
        lane = jax.lax.broadcasted_iota(jnp.int32, (ct, lt), 1)
        valid = (l * lt + lane) < hw

    def stats(i):
        xi = x_ref[i].astype(jnp.float32)
        if needs_mask:
            xi = jnp.where(valid, xi, 0.0)
        sum_ref[...] += jnp.sum(xi, axis=-1, keepdims=True)
        ss_ref[...] += jnp.sum(xi * xi, axis=-1, keepdims=True)
    _foreach(n, stats)


def _bn_norm_kernel(x_ref, scale_ref, shift_ref, o_ref):
    n = x_ref.shape[0]
    scale = scale_ref[...]          # (Ct, 1), hoisted out of the loop
    shift = shift_ref[...]

    def norm(i):
        xi = x_ref[i].astype(jnp.float32)
        o_ref[i] = (xi * scale + shift).astype(o_ref.dtype)
    _foreach(n, norm)


def _two_pass(x3, g2, b2, budget, vmem_limit, itemsize):
    N, C, HW = x3.shape
    ct = C if C < 8 else 8
    HWp = _round_up(HW, 128)
    # Normalize pass is the bigger consumer: in + out double-buffered + streamed temps.
    per_lane = 4 * N * ct * itemsize + 4 * ct * 4
    lt = max(128, (budget // max(per_lane, 1)) // 128 * 128)
    lt = min(lt, HWp)
    nc, nl = pl.cdiv(C, ct), pl.cdiv(HW, lt)

    # Pass 1: per-channel sum / sum-of-squares (reads x once).
    sums, sqs = pl.pallas_call(
        functools.partial(_bn_stats_kernel, hw=HW, lt=lt),
        out_shape=(jax.ShapeDtypeStruct((C, 1), jnp.float32),
                   jax.ShapeDtypeStruct((C, 1), jnp.float32)),
        grid_spec=pltpu.PrefetchScalarGridSpec(
            num_scalar_prefetch=0,
            grid=(nc, nl),
            in_specs=[pl.BlockSpec((N, ct, lt), lambda c, l: (0, c, l))],
            out_specs=[pl.BlockSpec((ct, 1), lambda c, l: (c, 0)),
                       pl.BlockSpec((ct, 1), lambda c, l: (c, 0))],
        ),
        compiler_params=pltpu.CompilerParams(
            dimension_semantics=("parallel", "arbitrary"),
            vmem_limit_bytes=vmem_limit,
        ),
        cost_estimate=pl.CostEstimate(
            flops=3 * N * C * HW,
            transcendentals=0,
            bytes_accessed=N * C * HW * itemsize + 2 * C * 4),
    )(x3)

    # Tiny (C,) epilogue in plain JAX: fold stats + gamma/beta into scale/shift.
    inv_count = 1.0 / float(N * HW)
    mean = sums * inv_count
    var = jnp.maximum(sqs * inv_count - mean * mean, 0.0)
    inv_std = jax.lax.rsqrt(var + EPS)
    scale = g2 * inv_std
    shift = b2 - mean * scale

    # Pass 2: elementwise FMA (reads x again, writes y once).
    return pl.pallas_call(
        _bn_norm_kernel,
        out_shape=jax.ShapeDtypeStruct((N, C, HW), x3.dtype),
        grid_spec=pltpu.PrefetchScalarGridSpec(
            num_scalar_prefetch=0,
            grid=(nc, nl),
            in_specs=[
                pl.BlockSpec((N, ct, lt), lambda c, l: (0, c, l)),
                pl.BlockSpec((ct, 1), lambda c, l: (c, 0)),
                pl.BlockSpec((ct, 1), lambda c, l: (c, 0)),
            ],
            out_specs=pl.BlockSpec((N, ct, lt), lambda c, l: (0, c, l)),
        ),
        compiler_params=pltpu.CompilerParams(
            dimension_semantics=("parallel", "parallel"),
            vmem_limit_bytes=vmem_limit,
        ),
        cost_estimate=pl.CostEstimate(
            flops=2 * N * C * HW,
            transcendentals=0,
            bytes_accessed=2 * N * C * HW * itemsize + 2 * C * 4),
    )(x3, scale, shift)


# ----------------------------------- wrapper -----------------------------------

def switch_batch_norm2d(x_nchw, gamma, beta, *, force_two_pass=False):
    """Training-mode BatchNorm2d forward (normalization + affine only).

    x_nchw: (N, C, H, W); gamma, beta: (C,). Returns (N, C, H, W), dtype of x.
    """
    N, C, H, W = x_nchw.shape
    HW = H * W
    x3 = x_nchw.reshape(N, C, HW)                # free reshape -- no transpose
    g2 = gamma.reshape(C, 1).astype(jnp.float32)
    b2 = beta.reshape(C, 1).astype(jnp.float32)
    itemsize = jnp.dtype(x_nchw.dtype).itemsize

    budget, vmem_limit = _vmem_budgets()
    HWp = _round_up(HW, 128)                     # lane padding is real VMEM
    # One-pass slab cost per channel: in + out double-buffered (padded HW) plus
    # streamed f32 temporaries (bf16 upcast / x*x / FMA result) per N-slice.
    per_ch = 4 * N * HWp * itemsize + 4 * HWp * 4
    min_ct = C if C < 8 else 8

    if (not force_two_pass) and min_ct * per_ch <= budget:
        y3 = _one_pass(x3, g2, b2, per_ch, budget, vmem_limit, itemsize)
    else:
        y3 = _two_pass(x3, g2, b2, budget, vmem_limit, itemsize)
    return y3.reshape(N, C, H, W)


if __name__ == "__main__":
    key = jax.random.PRNGKey(0)
    k = jax.random.split(key, 6)

    def ref_bn(x, gamma, beta):
        mean = jnp.mean(x, axis=(0, 2, 3), keepdims=True)
        var = jnp.mean((x - mean) ** 2, axis=(0, 2, 3), keepdims=True)
        g = gamma.reshape(1, -1, 1, 1)
        b = beta.reshape(1, -1, 1, 1)
        return (x - mean) / jnp.sqrt(var + EPS) * g + b

    # Path A: single-pass (whole-HW slab) at the module's small shape.
    N, C, H, W = 2, 4, 16, 16
    x = jax.random.normal(k[0], (N, C, H, W), dtype=jnp.float32) * 2.0 + 0.5
    gamma = 1.0 + 0.1 * jax.random.normal(k[1], (C,), dtype=jnp.float32)
    beta = 0.1 * jax.random.normal(k[2], (C,), dtype=jnp.float32)
    y = jax.block_until_ready(switch_batch_norm2d(x, gamma, beta))
    assert y.shape == x.shape and y.dtype == x.dtype
    assert float(jnp.max(jnp.abs(y - ref_bn(x, gamma, beta)))) < 1e-4, "one-pass mismatch"

    # Path B: two-pass streaming fallback (forced small; exercises HW chunking + lane mask).
    N2, C2, H2, W2 = 2, 16, 12, 12               # HW=144 -> partial 128-lane chunk
    x2 = jax.random.normal(k[3], (N2, C2, H2, W2), dtype=jnp.float32) * 1.5 - 0.25
    gamma2 = 1.0 + 0.1 * jax.random.normal(k[4], (C2,), dtype=jnp.float32)
    beta2 = 0.1 * jax.random.normal(k[5], (C2,), dtype=jnp.float32)
    y2 = jax.block_until_ready(switch_batch_norm2d(x2, gamma2, beta2, force_two_pass=True))
    assert y2.shape == x2.shape and y2.dtype == x2.dtype
    assert float(jnp.max(jnp.abs(y2 - ref_bn(x2, gamma2, beta2)))) < 1e-4, "two-pass mismatch"

    print("KERNEL_OK")
</pallas_src>

<mosaic_0001>
module attributes {stable_mosaic.version = 11 : i64} {
  func.func @_bn_onepass_kernel(%arg0: i32, %arg1: memref<2x4x256xf32, #tpu.memory_space<vmem>>, %arg2: memref<4x1xf32, #tpu.memory_space<vmem>>, %arg3: memref<4x1xf32, #tpu.memory_space<vmem>>, %arg4: memref<2x4x256xf32, #tpu.memory_space<vmem>>, %arg5: memref<4x1xf32, #tpu.memory_space<vmem>>, %arg6: memref<4x1xf32, #tpu.memory_space<vmem>>) attributes {dimension_semantics = [#tpu.dimension_semantics<parallel>], iteration_bounds = array<i64: 1>, scalar_prefetch = 0 : i64, scratch_operands = 2 : i64, tpu.core_type = #tpu.core_type<tc>, window_params = [{transform_indices = @transform_0, window_bounds = array<i64: 2, 4, 256>}, {transform_indices = @transform_1, window_bounds = array<i64: 4, 1>}, {transform_indices = @transform_2, window_bounds = array<i64: 4, 1>}, {transform_indices = @transform_3, window_bounds = array<i64: 2, 4, 256>}]} {
    %cst = arith.constant 0.000000e+00 : f32
    %0 = vector.broadcast %cst : f32 to vector<4x1xf32>
    %c0 = arith.constant 0 : index
    %c0_0 = arith.constant 0 : index
    %1 = vector.load %arg5[%c0, %c0_0] : memref<4x1xf32, #tpu.memory_space<vmem>>, vector<4x1xf32>
    tpu.vector_store %arg5[%c0, %c0_0], %0 {strides = array<i32>} : memref<4x1xf32, #tpu.memory_space<vmem>>, vector<4x1xf32>,
    %cst_1 = arith.constant 0.000000e+00 : f32
    %2 = vector.broadcast %cst_1 : f32 to vector<4x1xf32>
    %c0_2 = arith.constant 0 : index
    %c0_3 = arith.constant 0 : index
    %3 = vector.load %arg6[%c0_2, %c0_3] : memref<4x1xf32, #tpu.memory_space<vmem>>, vector<4x1xf32>
    tpu.vector_store %arg6[%c0_2, %c0_3], %2 {strides = array<i32>} : memref<4x1xf32, #tpu.memory_space<vmem>>, vector<4x1xf32>,
    %c0_4 = arith.constant 0 : index
    %c0_5 = arith.constant 0 : index
    %c0_6 = arith.constant 0 : index
    %4 = vector.load %arg1[%c0_4, %c0_5, %c0_6] : memref<2x4x256xf32, #tpu.memory_space<vmem>>, vector<1x4x256xf32>
    %5 = vector.shape_cast %4 : vector<1x4x256xf32> to vector<4x256xf32>
    %c0_7 = arith.constant 0 : index
    %c0_8 = arith.constant 0 : index
    %6 = vector.load %arg5[%c0_7, %c0_8] : memref<4x1xf32, #tpu.memory_space<vmem>>, vector<4x1xf32>
    %cst_9 = arith.constant dense<0.000000e+00> : vector<4xf32>
    %7 = vector.multi_reduction <add>, %5, %cst_9 [1] : vector<4x256xf32> to vector<4xf32>
    %8 = vector.shape_cast %7 : vector<4xf32> to vector<4x1xf32>
    %9 = arith.addf %6, %8 : vector<4x1xf32>
    %c0_10 = arith.constant 0 : index
    %c0_11 = arith.constant 0 : index
    %10 = vector.load %arg5[%c0_10, %c0_11] : memref<4x1xf32, #tpu.memory_space<vmem>>, vector<4x1xf32>
    tpu.vector_store %arg5[%c0_10, %c0_11], %9 {strides = array<i32>} : memref<4x1xf32, #tpu.memory_space<vmem>>, vector<4x1xf32>,
    %c0_12 = arith.constant 0 : index
    %c0_13 = arith.constant 0 : index
    %11 = vector.load %arg6[%c0_12, %c0_13] : memref<4x1xf32, #tpu.memory_space<vmem>>, vector<4x1xf32>
    %12 = arith.mulf %5, %5 : vector<4x256xf32>
    %cst_14 = arith.constant dense<0.000000e+00> : vector<4xf32>
    %13 = vector.multi_reduction <add>, %12, %cst_14 [1] : vector<4x256xf32> to vector<4xf32>
    %14 = vector.shape_cast %13 : vector<4xf32> to vector<4x1xf32>
    %15 = arith.addf %11, %14 : vector<4x1xf32>
    %c0_15 = arith.constant 0 : index
    %c0_16 = arith.constant 0 : index
    %16 = vector.load %arg6[%c0_15, %c0_16] : memref<4x1xf32, #tpu.memory_space<vmem>>, vector<4x1xf32>
    tpu.vector_store %arg6[%c0_15, %c0_16], %15 {strides = array<i32>} : memref<4x1xf32, #tpu.memory_space<vmem>>, vector<4x1xf32>,
    %c1 = arith.constant 1 : index
    %c0_17 = arith.constant 0 : index
    %c0_18 = arith.constant 0 : index
    %17 = vector.load %arg1[%c1, %c0_17, %c0_18] : memref<2x4x256xf32, #tpu.memory_space<vmem>>, vector<1x4x256xf32>
    %18 = vector.shape_cast %17 : vector<1x4x256xf32> to vector<4x256xf32>
    %c0_19 = arith.constant 0 : index
    %c0_20 = arith.constant 0 : index
    %19 = vector.load %arg5[%c0_19, %c0_20] : memref<4x1xf32, #tpu.memory_space<vmem>>, vector<4x1xf32>
    %cst_21 = arith.constant dense<0.000000e+00> : vector<4xf32>
    %20 = vector.multi_reduction <add>, %18, %cst_21 [1] : vector<4x256xf32> to vector<4xf32>
    %21 = vector.shape_cast %20 : vector<4xf32> to vector<4x1xf32>
    %22 = arith.addf %19, %21 : vector<4x1xf32>
    %c0_22 = arith.constant 0 : index
    %c0_23 = arith.constant 0 : index
    %23 = vector.load %arg5[%c0_22, %c0_23] : memref<4x1xf32, #tpu.memory_space<vmem>>, vector<4x1xf32>
    tpu.vector_store %arg5[%c0_22, %c0_23], %22 {strides = array<i32>} : memref<4x1xf32, #tpu.memory_space<vmem>>, vector<4x1xf32>,
    %c0_24 = arith.constant 0 : index
    %c0_25 = arith.constant 0 : index
    %24 = vector.load %arg6[%c0_24, %c0_25] : memref<4x1xf32, #tpu.memory_space<vmem>>, vector<4x1xf32>
    %25 = arith.mulf %18, %18 : vector<4x256xf32>
    %cst_26 = arith.constant dense<0.000000e+00> : vector<4xf32>
    %26 = vector.multi_reduction <add>, %25, %cst_26 [1] : vector<4x256xf32> to vector<4xf32>
    %27 = vector.shape_cast %26 : vector<4xf32> to vector<4x1xf32>
    %28 = arith.addf %24, %27 : vector<4x1xf32>
    %c0_27 = arith.constant 0 : index
    %c0_28 = arith.constant 0 : index
    %29 = vector.load %arg6[%c0_27, %c0_28] : memref<4x1xf32, #tpu.memory_space<vmem>>, vector<4x1xf32>
    tpu.vector_store %arg6[%c0_27, %c0_28], %28 {strides = array<i32>} : memref<4x1xf32, #tpu.memory_space<vmem>>, vector<4x1xf32>,
    %c0_29 = arith.constant 0 : index
    %c0_30 = arith.constant 0 : index
    %30 = vector.load %arg5[%c0_29, %c0_30] : memref<4x1xf32, #tpu.memory_space<vmem>>, vector<4x1xf32>
    %cst_31 = arith.constant 0.001953125 : f32
    %31 = vector.broadcast %cst_31 : f32 to vector<4x1xf32>
    %32 = arith.mulf %30, %31 : vector<4x1xf32>
    %c0_32 = arith.constant 0 : index
    %c0_33 = arith.constant 0 : index
    %33 = vector.load %arg6[%c0_32, %c0_33] : memref<4x1xf32, #tpu.memory_space<vmem>>, vector<4x1xf32>
    %cst_34 = arith.constant 0.001953125 : f32
    %34 = vector.broadcast %cst_34 : f32 to vector<4x1xf32>
    %35 = arith.mulf %33, %34 : vector<4x1xf32>
    %36 = arith.mulf %32, %32 : vector<4x1xf32>
    %37 = arith.subf %35, %36 : vector<4x1xf32>
    %cst_35 = arith.constant 0.000000e+00 : f32
    %38 = vector.broadcast %cst_35 : f32 to vector<4x1xf32>
    %39 = arith.maximumf %37, %38 : vector<4x1xf32>
    %cst_36 = arith.constant 9.99999974E-5 : f32
    %40 = vector.broadcast %cst_36 : f32 to vector<4x1xf32>
    %41 = arith.addf %39, %40 : vector<4x1xf32>
    %42 = math.rsqrt %41 : vector<4x1xf32>
    %c0_37 = arith.constant 0 : index
    %c0_38 = arith.constant 0 : index
    %43 = vector.load %arg2[%c0_37, %c0_38] : memref<4x1xf32, #tpu.memory_space<vmem>>, vector<4x1xf32>
    %44 = arith.mulf %43, %42 : vector<4x1xf32>
    %c0_39 = arith.constant 0 : index
    %c0_40 = arith.constant 0 : index
    %45 = vector.load %arg3[%c0_39, %c0_40] : memref<4x1xf32, #tpu.memory_space<vmem>>, vector<4x1xf32>
    %46 = arith.mulf %32, %44 : vector<4x1xf32>
    %47 = arith.subf %45, %46 : vector<4x1xf32>
    %c0_41 = arith.constant 0 : index
    %c0_42 = arith.constant 0 : index
    %c0_43 = arith.constant 0 : index
    %48 = vector.load %arg1[%c0_41, %c0_42, %c0_43] : memref<2x4x256xf32, #tpu.memory_space<vmem>>, vector<1x4x256xf32>
    %49 = vector.shape_cast %48 : vector<1x4x256xf32> to vector<4x256xf32>
    %50 = vector.broadcast %44 : vector<4x1xf32> to vector<4x256xf32>
    %51 = arith.mulf %49, %50 : vector<4x256xf32>
    %52 = vector.broadcast %47 : vector<4x1xf32> to vector<4x256xf32>
    %53 = arith.addf %51, %52 : vector<4x256xf32>
    %c0_44 = arith.constant 0 : index
    %c0_45 = arith.constant 0 : index
    %c0_46 = arith.constant 0 : index
    %54 = vector.load %arg4[%c0_44, %c0_45, %c0_46] : memref<2x4x256xf32, #tpu.memory_space<vmem>>, vector<1x4x256xf32>
    %55 = vector.shape_cast %54 : vector<1x4x256xf32> to vector<4x256xf32>
    %56 = vector.shape_cast %53 : vector<4x256xf32> to vector<1x4x256xf32>
    tpu.vector_store %arg4[%c0_44, %c0_45, %c0_46], %56 {strides = array<i32>} : memref<2x4x256xf32, #tpu.memory_space<vmem>>, vector<1x4x256xf32>,
    %c1_47 = arith.constant 1 : index
    %c0_48 = arith.constant 0 : index
    %c0_49 = arith.constant 0 : index
    %57 = vector.load %arg1[%c1_47, %c0_48, %c0_49] : memref<2x4x256xf32, #tpu.memory_space<vmem>>, vector<1x4x256xf32>
    %58 = vector.shape_cast %57 : vector<1x4x256xf32> to vector<4x256xf32>
    %59 = vector.broadcast %44 : vector<4x1xf32> to vector<4x256xf32>
    %60 = arith.mulf %58, %59 : vector<4x256xf32>
    %61 = vector.broadcast %47 : vector<4x1xf32> to vector<4x256xf32>
    %62 = arith.addf %60, %61 : vector<4x256xf32>
    %c1_50 = arith.constant 1 : index
    %c0_51 = arith.constant 0 : index
    %c0_52 = arith.constant 0 : index
    %63 = vector.load %arg4[%c1_50, %c0_51, %c0_52] : memref<2x4x256xf32, #tpu.memory_space<vmem>>, vector<1x4x256xf32>
    %64 = vector.shape_cast %63 : vector<1x4x256xf32> to vector<4x256xf32>
    %65 = vector.shape_cast %62 : vector<4x256xf32> to vector<1x4x256xf32>
    tpu.vector_store %arg4[%c1_50, %c0_51, %c0_52], %65 {strides = array<i32>} : memref<2x4x256xf32, #tpu.memory_space<vmem>>, vector<1x4x256xf32>,
    return
  }
  func.func @transform_0(%arg0: i32) -> (i32, i32, i32) {
    %c0_i32 = arith.constant 0 : i32
    %c0_i32_0 = arith.constant 0 : i32
    %c0_i32_1 = arith.constant 0 : i32
    return %c0_i32, %arg0, %c0_i32_0 : i32, i32, i32
  }
  func.func @transform_1(%arg0: i32) -> (i32, i32) {
    %c0_i32 = arith.constant 0 : i32
    %c0_i32_0 = arith.constant 0 : i32
    return %arg0, %c0_i32 : i32, i32
  }
  func.func @transform_2(%arg0: i32) -> (i32, i32) {
    %c0_i32 = arith.constant 0 : i32
    %c0_i32_0 = arith.constant 0 : i32
    return %arg0, %c0_i32 : i32, i32
  }
  func.func @transform_3(%arg0: i32) -> (i32, i32, i32) {
    %c0_i32 = arith.constant 0 : i32
    %c0_i32_0 = arith.constant 0 : i32
    %c0_i32_1 = arith.constant 0 : i32
    return %c0_i32, %arg0, %c0_i32_0 : i32, i32, i32
  }
}

</mosaic_0001>

<bundles_post_ra>
// kernel: tpu_custom_call.1
= control target key start
LH: loop header
LB: loop body
LE: loop exit
PB: predicated region body
PF: predicated region fallthrough
CT: control target
= control target key end

     0   :  { %8 = vsyncpa [#allocation5], 0  ;;  %s299_s0 = inlined_call_operand.hbm [shape: f32[2,4,256], index: 0, kind: input, shape index: {}]   ;;  %s300_s1 = inlined_call_operand.vmem [shape: f32[4,1], index: 1, kind: input, shape index: {}]   ;;  %s301_s2 = inlined_call_operand.vmem [shape: f32[4,1], index: 2, kind: input, shape index: {}]   ;;  %s302_s3 = inlined_call_operand.hbm [shape: f32[2,4,256], index: 3, kind: output, shape index: {}]  }
   0x1   :  { %9 = vsyncpa [#allocation6], 0  ;;  %s14_s14 = sshll.u32 %s299_s0, 4  ;;  %s228_s15 = smov [#allocation4]   ;;  %s15_s14 = int_to_ptr.hbm [resolvable:$true] %s14_s14 }
   0x2   :  { %s16_s16 = sshll.u32 %s228_s15, 4  ;;  %s229_s17 = smov 128   ;;  %s17_s16 = int_to_ptr.vmem [resolvable:$true] %s16_s16 }
   0x3   :  { %s230_s18 = smov 8  }
   0x4   :  { %22 = dma.hbm_to_vmem [thread:$0]  %s15_s14, 256, %s17_s16, [#allocation5], %s229_s17, %s229_s17, %s230_s18  }
   0x5   :  { %224 = dma.done.wait [#allocation5], 256  }
   0x6   :  { %225 = vsyncadd [#allocation5], 4294967040  ;;  %v261_v0 = vld [vmem:[#allocation4] sm:$0xff]  ;;  %vm31_vm0 = vcmask 3072   ;;  %v231_v2 = vmov 0.0   ;;  %vm42_vm1 = vcmask 1043456  }
   0x7   :  { %37 = vst [vmem:[#allocation1] ss:$2 sm:$0xff] %v261_v0  ;;  %v51_v1 = vmul.f32 %v261_v0, %v261_v0  ;;  %v270_v8 = vld [vmem:[#allocation4 + $0x8] sm:$0xff]  ;;  %v232_v25 = vmov 0   ;;  %v114_v52 = vld [vmem:[%s300_s1] sm:$0xf] }
   0x8   :  { %32 = vst.msk [vmem:[#allocation2] sm:$0xf] %vm31_vm0, %v231_v2  ;;  %v82_v14 = vmul.f32 %v270_v8, %v270_v8  ;;  %172 = vset.pattern.permute.xlu2 %v232_v25  ;;  %173 = vset.pattern.permute.xlu0 %v232_v25  ;;  %v116_v56 = vld [vmem:[%s301_s2] sm:$0xf]  ;;  %v233_v58 = vmov 839922192  }
   0x9   :  { %33 = vst.msk [vmem:[#allocation3] sm:$0xf] %vm31_vm0, %v231_v2  ;;  %v125_v59 = vunpack.c.l.s4 %v233_v58  ;;  %s234_s1 = smov [#allocation7]   ;;  %s152_s25 = sshll.u32 %s302_s3, 4  ;;  %s153_s25 = int_to_ptr.hbm [resolvable:$true] %s152_s25 }
   0xa   :  { %s150_s22 = sshll.u32 %s234_s1, 4  ;;  %s151_s22 = int_to_ptr.vmem [resolvable:$true] %s150_s22 }
   0xb   :  { %v126_v61 = vunpack.c.0.s8 %v125_v59 }
   0xe   :  { %v38_v3 = vld.sshfl [vmem:[#allocation1] sm:$0xff pattern:$0x75316420]  ;;  %v39_v4 = vld.sshfl [vmem:[#allocation1 + $0x8] sm:$0xff pattern:$0x75316420] }
   0xf   :  { %v43_v5 = vsel %vm42_vm1, %v38_v3, 0.0  ;;  %v44_v6 = vsel %vm42_vm1, %v39_v4, 0.0  ;;  %53 = vst [vmem:[#allocation1] ss:$2 sm:$0xff] %v51_v1  ;;  %v35_v26 = vld [vmem:[#allocation2] sm:$0xf] }
  0x10   :  { %v45_v7 = vadd.f32 %v44_v6, %v43_v5  ;;  %v50_v29 = vld [vmem:[#allocation3] sm:$0xf] }
  0x12   :  { %46 = vadd.xlane.f32.xlu0 %v45_v7 }
  0x16   :  { %v54_v9 = vld.sshfl [vmem:[#allocation1] sm:$0xff pattern:$0x75316420]  ;;  %v55_v10 = vld.sshfl [vmem:[#allocation1 + $0x8] sm:$0xff pattern:$0x75316420] }
  0x17   :  { %v58_v11 = vsel %vm42_vm1, %v54_v9, 0.0  ;;  %v59_v12 = vsel %vm42_vm1, %v55_v10, 0.0  ;;  %69 = vst [vmem:[#allocation1] ss:$2 sm:$0xff] %v270_v8 }
  0x18   :  { %v60_v13 = vadd.f32 %v59_v12, %v58_v11 }
  0x1a   :  { %61 = vadd.xlane.f32.xlu0 %v60_v13 }
  0x1e   :  { %v70_v15 = vld.sshfl [vmem:[#allocation1] sm:$0xff pattern:$0x75316420]  ;;  %v71_v16 = vld.sshfl [vmem:[#allocation1 + $0x8] sm:$0xff pattern:$0x75316420] }
  0x1f   :  { %v74_v17 = vsel %vm42_vm1, %v70_v15, 0.0  ;;  %v75_v18 = vsel %vm42_vm1, %v71_v16, 0.0  ;;  %84 = vst [vmem:[#allocation1] ss:$2 sm:$0xff] %v82_v14 }
  0x20   :  { %v76_v19 = vadd.f32 %v75_v18, %v74_v17 }
  0x22   :  { %77 = vadd.xlane.f32.xlu1 %v76_v19 }
  0x26   :  { %v85_v20 = vld.sshfl [vmem:[#allocation1] sm:$0xff pattern:$0x75316420]  ;;  %v86_v21 = vld.sshfl [vmem:[#allocation1 + $0x8] sm:$0xff pattern:$0x75316420] }
  0x27   :  { %v89_v22 = vsel %vm42_vm1, %v85_v20, 0.0  ;;  %v90_v23 = vsel %vm42_vm1, %v86_v21, 0.0 }
  0x28   :  { %v91_v24 = vadd.f32 %v90_v23, %v89_v22 }
  0x2a   :  { %92 = vadd.xlane.f32.xlu1 %v91_v24 }
  0x85   :  { %v47_v27 = vpop.xlane.xlu0 %46 }
  0x86   :  { %v48_v28 = vadd.f32 %v47_v27, %v35_v26 }
  0x88   :  { %49 = vst.msk [vmem:[#allocation2] sm:$0xf] %vm31_vm0, %v48_v28 }
  0x8d   :  { %v62_v30 = vpop.xlane.xlu0 %61 }
  0x8e   :  { %v63_v31 = vadd.f32 %v62_v30, %v50_v29 }
  0x8f   :  { %v67_v32 = vld [vmem:[#allocation2] sm:$0xf] }
  0x90   :  { %64 = vst.msk [vmem:[#allocation3] sm:$0xf] %vm31_vm0, %v63_v31 }
  0x95   :  { %v78_v33 = vpop.xlane.xlu1 %77 }
  0x96   :  { %v79_v34 = vadd.f32 %v78_v33, %v67_v32 }
  0x97   :  { %v81_v35 = vld [vmem:[#allocation3] sm:$0xf] }
  0x98   :  { %80 = vst.msk [vmem:[#allocation2] sm:$0xf] %vm31_vm0, %v79_v34 }
  0x9d   :  { %v93_v36 = vpop.xlane.xlu1 %92 }
  0x9e   :  { %v94_v37 = vadd.f32 %v93_v36, %v81_v35 }
  0x9f   :  { %v96_v38 = vld [vmem:[#allocation2] sm:$0xf] }
  0xa0   :  { %95 = vst.msk [vmem:[#allocation3] sm:$0xf] %vm31_vm0, %v94_v37  ;;  %v97_v39 = vmul.f32 0.001953125, %v96_v38 }
  0xa2   :  { %v100_v42 = vmul.f32 %v97_v39, %v97_v39 }
  0xa7   :  { %v98_v40 = vld [vmem:[#allocation3] sm:$0xf] }
  0xa8   :  { %v99_v41 = vmul.f32 0.001953125, %v98_v40 }
  0xaa   :  { %v101_v43 = vsub.f32 %v99_v41, %v100_v42 }
  0xac   :  { %v102_v44 = vmax.f32 %v101_v43, 0.0 }
  0xae   :  { %v103_v45 = vadd.f32 0.0001, %v102_v44 }
  0xb0   :  { %174 = vrsqrt.f32 %v103_v45  ;;  %vm110_vm3 = vweird.f32 %v103_v45 }
  0xb6   :  { %v175_v46 = vpop.eup %174 }
  0xb7   :  { %v105_v47 = vmul.f32 %v175_v46, %v103_v45  ;;  %vm111_vm2 = vweird.f32 %v175_v46 }
  0xb8   :  { %vm112_vm4 = vmor %vm110_vm3, %vm111_vm2 }
  0xb9   :  { %v106_v48 = vmul.f32 %v175_v46, %v105_v47 }
  0xbb   :  { %v107_v49 = vmul.f32 0.5, %v106_v48 }
  0xbd   :  { %v108_v50 = vsub.f32 1.5, %v107_v49 }
  0xbf   :  { %v109_v51 = vmul.f32 %v175_v46, %v108_v50 }
  0xc1   :  { %v113_v53 = vsel %vm112_vm4, %v175_v46, %v109_v51 }
  0xc2   :  { %v115_v54 = vmul.f32 %v114_v52, %v113_v53 }
  0xc4   :  { %122 = vperm.xlu2 %172, %v115_v54   ;;  %v117_v55 = vmul.f32 %v115_v54, %v97_v39 }
  0xc6   :  { %v118_v57 = vsub.f32 %v116_v56, %v117_v55 }
  0xcc   :  { %132 = vperm.xlu2 %172, %v118_v57  }
 0x11e   :  { %v123_v60 = vpop.permute.xlu2 %122 }
 0x11f   :  { %v127_v62 = vperm.slane %v123_v60, %v126_v61 }
 0x121   :  { %v129_v1 = vmul.f32 %v127_v62, %v261_v0  ;;  %v142_v2 = vmul.f32 %v127_v62, %v270_v8 }
 0x126   :  { %v133_v63 = vpop.permute.xlu2 %132 }
 0x127   :  { %v137_v3 = vperm.slane %v133_v63, %v126_v61 }
 0x129   :  { %v139_v4 = vadd.f32 %v137_v3, %v129_v1  ;;  %v143_v5 = vadd.f32 %v142_v2, %v137_v3 }
 0x12b   :  { %140 = vst [vmem:[#allocation7] sm:$0xff] %v139_v4 }
 0x12c   :  { %145 = vst [vmem:[#allocation7 + $0x8] sm:$0xff] %v143_v5 }
 0x12d   :  { %158 = dma.vmem_to_hbm [thread:$0]  %s151_s22, 256, %s153_s25, [#allocation6], %s229_s17, %s229_s17, %s230_s18  }
 0x12e   :  { %226 = dma.done.wait [#allocation6], 256  }
 0x12f   :  { %227 = vsyncadd [#allocation6], 4294967040 }
 0x130   :  { %163 = vsyncpa [#allocation5], 1 }
 0x131   :  { %164 = vsyncpa [#allocation6], 1 }

</bundles_post_ra>
